<compile_context>
chip_gen: v6e
topology: v6e:2x2x1
jax: 0.10.0
libtpu: 0.0.40
codegen_flags: <defaults>
</compile_context>

<pallas_src>
import math

import jax
import jax.numpy as jnp
from jax.experimental import pallas as pl
from jax.experimental.pallas import tpu as pltpu


def _round_up(x: int, m: int) -> int:
    return ((x + m - 1) // m) * m


def _dqn_kernel(x_ref, w1_ref, b1_ref, w2_ref, b2_ref, o_ref):
    # Layer 1 on the MXU: bf16 operands, f32 accumulation.
    h = jnp.dot(x_ref[...], w1_ref[...], preferred_element_type=jnp.float32)
    # Bias + ReLU in f32 on the VPU (padded hidden lanes stay exactly 0).
    h = jnp.maximum(h + b1_ref[...], 0.0)
    # Layer 2 on the MXU: cast activations to bf16, accumulate in f32.
    out = jnp.dot(h.astype(jnp.bfloat16), w2_ref[...],
                  preferred_element_type=jnp.float32)
    o_ref[...] = (out + b2_ref[...]).astype(o_ref.dtype)


def prepare_dqn_params(w1, b1, w2, b2):
    """One-time param prep (call at init / after each param update, NOT per
    forward): pad the hidden dim to a lane multiple (128) and cast the matmul
    weights to bf16.  Biases stay f32 (VPU math is f32 on all generations)."""
    in_dim, hidden = w1.shape
    out_dim = w2.shape[1]
    hid_p = _round_up(hidden, 128)
    w1_p = (jnp.zeros((in_dim, hid_p), jnp.bfloat16)
            .at[:, :hidden].set(w1.astype(jnp.bfloat16)))
    b1_p = (jnp.zeros((1, hid_p), jnp.float32)
            .at[:, :hidden].set(jnp.reshape(b1, (1, hidden)).astype(jnp.float32)))
    w2_p = (jnp.zeros((hid_p, out_dim), jnp.bfloat16)
            .at[:hidden, :].set(w2.astype(jnp.bfloat16)))
    b2_p = jnp.reshape(b2, (1, out_dim)).astype(jnp.float32)
    return w1_p, b1_p, w2_p, b2_p


def _pick_tile(batch: int, block_b: int) -> int:
    """Batch tile: as large as block_b allows, but capped so the grid has ~4
    steps (keeps both v7x TensorCores fed via the parallel batch axis).  Tiles
    are multiples of 16 (bf16 sublane packing); a tile covering the whole batch
    collapses to the exact batch (full-dim blocks are always legal)."""
    tile = _round_up(pl.cdiv(batch, 4), 16)
    tb = min(_round_up(block_b, 16), tile)
    if tb >= batch:
        return batch
    return tb


def dqn_forward(x, w1_p, b1_p, w2_p, b2_p, *, block_b: int = 4096):
    """Fused DQN MLP forward.

    x            : (batch, input_dim) float32 or bfloat16
    w1_p, b1_p   : (input_dim, hid_p) bf16, (1, hid_p) f32      (prepared)
    w2_p, b2_p   : (hid_p, output_dim) bf16, (1, output_dim) f32 (prepared)
    returns (batch, output_dim) float32
    """
    batch, in_dim = x.shape
    hid_p = w1_p.shape[1]
    out_dim = w2_p.shape[1]

    # Stream activations as bf16 (halves the per-row input DMA).  For peak
    # perf the producer should already emit bf16 so this cast fuses upstream.
    x_bf = x if x.dtype == jnp.bfloat16 else x.astype(jnp.bfloat16)

    tb = _pick_tile(batch, block_b)
    grid = (pl.cdiv(batch, tb),)

    # Real traffic: bf16 x + bf16 weights + f32 biases in, unpadded f32 out.
    cost = pl.CostEstimate(
        flops=2 * batch * (in_dim * hid_p + hid_p * out_dim),
        transcendentals=0,
        bytes_accessed=(2 * batch * in_dim                       # x (bf16)
                        + 4 * batch * out_dim                    # out (f32)
                        + 2 * (in_dim * hid_p + hid_p * out_dim) # weights (bf16)
                        + 4 * (hid_p + out_dim)),                # biases (f32)
    )

    # Weights/biases use constant index_maps, so they stay VMEM-resident across
    # the grid.  (pipeline_mode=pl.Buffered(1) would drop their second buffer —
    # ~150 KB — but is left at the default for portability.)
    out = pl.pallas_call(
        _dqn_kernel,
        out_shape=jax.ShapeDtypeStruct((batch, out_dim), jnp.float32),
        grid=grid,
        in_specs=[
            pl.BlockSpec((tb, in_dim), lambda i: (i, 0)),       # x: streamed
            pl.BlockSpec((in_dim, hid_p), lambda i: (0, 0)),    # W1 (bf16)
            pl.BlockSpec((1, hid_p), lambda i: (0, 0)),         # b1 (f32)
            pl.BlockSpec((hid_p, out_dim), lambda i: (0, 0)),   # W2 (bf16)
            pl.BlockSpec((1, out_dim), lambda i: (0, 0)),       # b2 (f32)
        ],
        out_specs=pl.BlockSpec((tb, out_dim), lambda i: (i, 0)),  # unpadded store
        compiler_params=pltpu.CompilerParams(
            dimension_semantics=("parallel",),   # 2-TC sharding on v7x
        ),
        cost_estimate=cost,
    )(x_bf, w1_p, b1_p, w2_p, b2_p)

    return out


def init_dqn_params(key, input_dim, output_dim, hidden=64):
    """Deterministic init mirroring PyTorch nn.Linear defaults
    (uniform(-1/sqrt(fan_in), 1/sqrt(fan_in))), stored as (in, out)."""
    k1, k2, k3, k4 = jax.random.split(key, 4)
    bound1 = 1.0 / math.sqrt(input_dim)
    bound2 = 1.0 / math.sqrt(hidden)
    w1 = jax.random.uniform(k1, (input_dim, hidden), jnp.float32, -bound1, bound1)
    b1 = jax.random.uniform(k2, (1, hidden), jnp.float32, -bound1, bound1)
    w2 = jax.random.uniform(k3, (hidden, output_dim), jnp.float32, -bound2, bound2)
    b2 = jax.random.uniform(k4, (1, output_dim), jnp.float32, -bound2, bound2)
    return w1, b1, w2, b2


if __name__ == "__main__":
    key = jax.random.PRNGKey(0)
    k_params, k_x = jax.random.split(key)

    batch = 8
    input_dim = 16   # state dimension
    output_dim = 4   # number of actions

    w1, b1, w2, b2 = init_dqn_params(k_params, input_dim, output_dim)
    params = prepare_dqn_params(w1, b1, w2, b2)   # hoisted out of the hot path
    x = jax.random.normal(k_x, (batch, input_dim), jnp.float32)

    out = jax.block_until_ready(dqn_forward(x, *params))
    assert out.shape == (batch, output_dim)

    # Tight check against a bf16-matched reference (same math as the kernel).
    xb = x.astype(jnp.bfloat16)
    w1b = w1.astype(jnp.bfloat16)
    w2b = w2.astype(jnp.bfloat16)
    h_ref = jnp.maximum(
        jnp.dot(xb, w1b, preferred_element_type=jnp.float32) + b1, 0.0)
    ref_bf16 = jnp.dot(h_ref.astype(jnp.bfloat16), w2b,
                       preferred_element_type=jnp.float32) + b2
    assert jnp.allclose(out, ref_bf16, atol=1e-3, rtol=1e-3), \
        float(jnp.max(jnp.abs(out - ref_bf16)))

    # Loose check against the full-f32 PyTorch-equivalent math (bf16 streaming
    # costs a little precision, as expected).
    ref_f32 = jnp.maximum(x @ w1 + b1, 0.0) @ w2 + b2
    assert jnp.allclose(out, ref_f32, atol=5e-2, rtol=5e-2), \
        float(jnp.max(jnp.abs(out - ref_f32)))

    print("KERNEL_OK")
</pallas_src>

<mosaic_0001>
module attributes {stable_mosaic.version = 11 : i64} {
  func.func @_dqn_kernel(%arg0: i32, %arg1: memref<8x16xbf16, #tpu.memory_space<vmem>>, %arg2: memref<16x128xbf16, #tpu.memory_space<vmem>>, %arg3: memref<1x128xf32, #tpu.memory_space<vmem>>, %arg4: memref<128x4xbf16, #tpu.memory_space<vmem>>, %arg5: memref<1x4xf32, #tpu.memory_space<vmem>>, %arg6: memref<8x4xf32, #tpu.memory_space<vmem>>) attributes {dimension_semantics = [#tpu.dimension_semantics<parallel>], iteration_bounds = array<i64: 1>, scalar_prefetch = 0 : i64, scratch_operands = 0 : i64, tpu.core_type = #tpu.core_type<tc>, window_params = [{transform_indices = @transform_0, window_bounds = array<i64: 8, 16>}, {pipeline_mode = #tpu.pipeline_mode<synchronous>, transform_indices = @transform_1, window_bounds = array<i64: 16, 128>}, {pipeline_mode = #tpu.pipeline_mode<synchronous>, transform_indices = @transform_2, window_bounds = array<i64: 1, 128>}, {pipeline_mode = #tpu.pipeline_mode<synchronous>, transform_indices = @transform_3, window_bounds = array<i64: 128, 4>}, {pipeline_mode = #tpu.pipeline_mode<synchronous>, transform_indices = @transform_4, window_bounds = array<i64: 1, 4>}, {transform_indices = @transform_5, window_bounds = array<i64: 8, 4>}]} {
    %c0 = arith.constant 0 : index
    %c0_0 = arith.constant 0 : index
    %0 = vector.load %arg1[%c0, %c0_0] : memref<8x16xbf16, #tpu.memory_space<vmem>>, vector<8x16xbf16>
    %c0_1 = arith.constant 0 : index
    %c0_2 = arith.constant 0 : index
    %1 = vector.load %arg2[%c0_1, %c0_2] : memref<16x128xbf16, #tpu.memory_space<vmem>>, vector<16x128xbf16>
    %cst = arith.constant dense<0.000000e+00> : vector<8x128xf32>
    %2 = tpu.matmul %0, %1, %cst {dimension_numbers = #tpu.dot_dimension_numbers<[1], [0], [0], [1], [0, 0, 1, 1], [], []>} : vector<8x16xbf16>, vector<16x128xbf16>, vector<8x128xf32> -> vector<8x128xf32>
    %c0_3 = arith.constant 0 : index
    %c0_4 = arith.constant 0 : index
    %3 = vector.load %arg3[%c0_3, %c0_4] : memref<1x128xf32, #tpu.memory_space<vmem>>, vector<1x128xf32>
    %4 = vector.broadcast %3 : vector<1x128xf32> to vector<8x128xf32>
    %5 = arith.addf %2, %4 : vector<8x128xf32>
    %cst_5 = arith.constant 0.000000e+00 : f32
    %6 = vector.broadcast %cst_5 : f32 to vector<8x128xf32>
    %7 = arith.maximumf %5, %6 : vector<8x128xf32>
    %8 = arith.truncf %7 : vector<8x128xf32> to vector<8x128xbf16>
    %c0_6 = arith.constant 0 : index
    %c0_7 = arith.constant 0 : index
    %9 = vector.load %arg4[%c0_6, %c0_7] : memref<128x4xbf16, #tpu.memory_space<vmem>>, vector<128x4xbf16>
    %cst_8 = arith.constant dense<0.000000e+00> : vector<8x4xf32>
    %10 = tpu.matmul %8, %9, %cst_8 {dimension_numbers = #tpu.dot_dimension_numbers<[1], [0], [0], [1], [0, 0, 1, 1], [], []>} : vector<8x128xbf16>, vector<128x4xbf16>, vector<8x4xf32> -> vector<8x4xf32>
    %c0_9 = arith.constant 0 : index
    %c0_10 = arith.constant 0 : index
    %11 = vector.load %arg5[%c0_9, %c0_10] : memref<1x4xf32, #tpu.memory_space<vmem>>, vector<1x4xf32>
    %12 = vector.broadcast %11 : vector<1x4xf32> to vector<8x4xf32>
    %13 = arith.addf %10, %12 : vector<8x4xf32>
    %c0_11 = arith.constant 0 : index
    %c0_12 = arith.constant 0 : index
    %14 = vector.load %arg6[%c0_11, %c0_12] : memref<8x4xf32, #tpu.memory_space<vmem>>, vector<8x4xf32>
    tpu.vector_store %arg6[%c0_11, %c0_12], %13 {strides = array<i32>} : memref<8x4xf32, #tpu.memory_space<vmem>>, vector<8x4xf32>,
    return
  }
  func.func @transform_0(%arg0: i32) -> (i32, i32) {
    %c0_i32 = arith.constant 0 : i32
    %c0_i32_0 = arith.constant 0 : i32
    return %arg0, %c0_i32 : i32, i32
  }
  func.func @transform_1(%arg0: i32) -> (i32, i32) {
    %c0_i32 = arith.constant 0 : i32
    %c0_i32_0 = arith.constant 0 : i32
    %c0_i32_1 = arith.constant 0 : i32
    return %c0_i32, %c0_i32_0 : i32, i32
  }
  func.func @transform_2(%arg0: i32) -> (i32, i32) {
    %c0_i32 = arith.constant 0 : i32
    %c0_i32_0 = arith.constant 0 : i32
    %c0_i32_1 = arith.constant 0 : i32
    return %c0_i32, %c0_i32_0 : i32, i32
  }
  func.func @transform_3(%arg0: i32) -> (i32, i32) {
    %c0_i32 = arith.constant 0 : i32
    %c0_i32_0 = arith.constant 0 : i32
    %c0_i32_1 = arith.constant 0 : i32
    return %c0_i32, %c0_i32_0 : i32, i32
  }
  func.func @transform_4(%arg0: i32) -> (i32, i32) {
    %c0_i32 = arith.constant 0 : i32
    %c0_i32_0 = arith.constant 0 : i32
    %c0_i32_1 = arith.constant 0 : i32
    return %c0_i32, %c0_i32_0 : i32, i32
  }
  func.func @transform_5(%arg0: i32) -> (i32, i32) {
    %c0_i32 = arith.constant 0 : i32
    %c0_i32_0 = arith.constant 0 : i32
    return %arg0, %c0_i32 : i32, i32
  }
}

</mosaic_0001>

<bundles_post_ra>
// kernel: tpu_custom_call.1
= control target key start
LH: loop header
LB: loop body
LE: loop exit
PB: predicated region body
PF: predicated region fallthrough
CT: control target
= control target key end

     0   :  { %v260_v0 = vmov 0.0   ;;  %vm261_vm0 = vmmov 0   ;;  %vm37_vm1 = vcmask 130048   ;;  %vm194_vm2 = vcmask 31744   ;;  %s331_s1 = inlined_call_operand.vmem [shape: bf16[16,128], index: 1, kind: input, shape index: {}]   ;;  %s332_s0 = inlined_call_operand.vmem [shape: bf16[8,16], index: 0, kind: input, shape index: {}]   ;;  %s333_s3 = inlined_call_operand.vmem [shape: bf16[128,4], index: 3, kind: input, shape index: {}]   ;;  %s334_s2 = inlined_call_operand.vmem [shape: f32[1,128], index: 2, kind: input, shape index: {}]   ;;  %s335_s4 = inlined_call_operand.vmem [shape: f32[1,4], index: 4, kind: input, shape index: {}]   ;;  %s336_s5 = inlined_call_operand.vmem [shape: f32[8,4], index: 5, kind: output, shape index: {}]  }
   0x1   :  { %223 = vmatprep.subr.bf16.mxu0 %v260_v0  ;;  %v251_v1 = vld [vmem:[%s331_s1] sm:$0xff]   ;;  %225 = vmatprep.mubr.msk.bf16.mxu0 %vm261_vm0, %v260_v0  ;;  %v252_v3 = vld [vmem:[%s333_s3 + $0x38] sm:$0xff]   ;;  %v253_v4 = vld [vmem:[%s333_s3 + $0x30] sm:$0xff]  }
   0x2   :  { %v21_v2 = vld [vmem:[%s332_s0] sm:$0xf]  ;;  %229 = vmatprep.subr.bf16.mxu1 %v260_v0  ;;  %245 = vmatprep.mubr.msk.bf16.mxu1 %vm261_vm0, %v260_v0  ;;  %v254_v5 = vld [vmem:[%s333_s3 + $0x28] sm:$0xff]   ;;  %v256_v7 = vld [vmem:[%s333_s3 + $0x18] sm:$0xff]  }
   0x3   :  { %224 = vmatpush3.bf16.msra.mxu0 %v251_v1  ;;  %230 = vmatpush3.bf16.msra.mxu1 %v252_v3  ;;  %v255_v6 = vld [vmem:[%s333_s3 + $0x20] sm:$0xff]   ;;  %v257_v8 = vld [vmem:[%s333_s3 + $0x10] sm:$0xff]   ;;  %v258_v9 = vld [vmem:[%s333_s3 + $0x8] sm:$0xff]  }
   0x4   :  { %231 = vmatprep.subr.bf16.mxu1 %v260_v0  ;;  %v259_v10 = vld [vmem:[%s333_s3] sm:$0xff]  }
   0x5   :  { %v200_v11 = vld [vmem:[%s334_s2] ss:$0 sm:$0xff] }
   0x6   :  { %226 = vmatmul.mubr.msk.bf16.vlgmr.msra.gmra.mxu0 %vm37_vm1, %v21_v2  ;;  %v203_v19 = vld [vmem:[%s335_s4] ss:$0 sm:$0xff] }
   0x7   :  { %232 = vmatpush3.bf16.msra.mxu1 %v253_v4 }
   0x8   :  { %233 = vmatprep.subr.bf16.mxu1 %v260_v0 }
   0xb   :  { %234 = vmatpush3.bf16.msra.mxu1 %v254_v5 }
   0xc   :  { %235 = vmatprep.subr.bf16.mxu1 %v260_v0 }
   0xf   :  { %236 = vmatpush3.bf16.msra.mxu1 %v255_v6 }
  0x10   :  { %237 = vmatprep.subr.bf16.mxu1 %v260_v0 }
  0x13   :  { %238 = vmatpush3.bf16.msra.mxu1 %v256_v7 }
  0x14   :  { %239 = vmatprep.subr.bf16.mxu1 %v260_v0 }
  0x17   :  { %240 = vmatpush3.bf16.msra.mxu1 %v257_v8 }
  0x18   :  { %241 = vmatprep.subr.bf16.mxu1 %v260_v0 }
  0x1b   :  { %242 = vmatpush3.bf16.msra.mxu1 %v258_v9 }
  0x1c   :  { %243 = vmatprep.subr.bf16.mxu1 %v260_v0 }
  0x1f   :  { %244 = vmatpush3.bf16.msra.mxu1 %v259_v10 }
  0xc6   :  { %v75_v12 = vpop.f32.mrf.mxu0 }
  0xc7   :  { %v76_v13 = vadd.f32 %v200_v11, %v75_v12 }
  0xc8   :  { %v227_v14 = vpop.f32.mrf.mxu0 }
  0xc9   :  { %v81_v15 = vmax.f32 %v76_v13, 0.0 }
  0xca   :  { %v78_v16 = vpop.f32.mrf.mxu0 }
  0xcb   :  { %v82_v17 = vpack.c.bf16 %v81_v15, %v81_v15 }
  0xcc   :  { %v228_v18 = vpop.f32.mrf.mxu0 }
  0xcd   :  { %246 = vmatmul.mubr.bf16.vlgmr.msra.gmra.mxu1 %v82_v17 }
 0x18d   :  { %v188_v20 = vpop.f32.mrf.mxu1 }
 0x18e   :  { %v189_v21 = vadd.f32 %v203_v19, %v188_v20 }
 0x18f   :  { %v247_v22 = vpop.f32.mrf.mxu1 }
 0x190   :  { %195 = vst.msk [vmem:[%s336_s5] sm:$0xff] %vm194_vm2, %v189_v21 }
 0x191   :  { %v191_v23 = vpop.f32.mrf.mxu1 }
 0x193   :  { %v248_v24 = vpop.f32.mrf.mxu1 }

</bundles_post_ra>
